<compile_context>
chip_gen: v6e
topology: v6e:2x2x1
jax: 0.10.0
libtpu: 0.0.40
codegen_flags: <defaults>
</compile_context>

<pallas_src>
import functools
from collections import namedtuple

import jax
import jax.numpy as jnp
import numpy as np
from jax.experimental import pallas as pl
from jax.experimental.pallas import tpu as pltpu

LossTuple = namedtuple(
    "LossTuple",
    ["rpn_loc_loss", "rpn_cos_loss", "anchor_cls_loss",
     "roi_loc_loss", "roi_cls_loss", "total_loss"],
)

_LANE = 128
_VMEM = pl.BlockSpec(memory_space=pltpu.MemorySpace.VMEM)
_SMEM = pl.BlockSpec(memory_space=pltpu.MemorySpace.SMEM)


def _round_up(n, m):
    return ((n + m - 1) // m) * m


# ----------------------------------------------------------------------------
# Fused loss kernel: 4 packed VMEM slabs -> 6 SMEM scalars
#
# RPN f32 slab rows : [0:4]=rpn_loc  [4:8]=gt_rpn_loc
#                     [8:8+C]=rpn_cos  [8+C:8+2C]=gt_rpn_cos
#                     [8+2C:8+2C+K]=anchor-class logits          (lanes = anchors)
# RPN label slab    : row0=gt_rpn_label  row1=gt_anchor_class_label
# ROI f32 slab rows : [0:4]=roi_cls_loc  [4:8]=gt_roi_loc  [8:8+K2]=roi_score
# ROI label slab    : row0=gt_roi_label  row1=gt_roi_label2        (lanes = rois, -1 padded)
# ----------------------------------------------------------------------------
def _fused_loss_kernel(rpn_f32_ref, rpn_lab_ref, roi_f32_ref, roi_lab_ref, out_ref,
                       *, n_cos, k_anchor, k_roi, rpn_sigma, roi_sigma):
    f32 = jnp.float32

    # ---------------- RPN side (per-lane partial rows only) -----------------
    rpn_label = rpn_lab_ref[0:1, :]                       # (1, A) int32
    anchor_label = rpn_lab_ref[1:2, :]                    # (1, A) int32
    rpn_pos = (rpn_label > 0).astype(f32)                 # (1, A)
    rpn_valid = (rpn_label >= 0).astype(f32)              # (1, A)

    # rpn_loc_loss numerator: masked smooth-L1 (sigma = rpn_sigma), sum over 4 coords.
    rpn_loc = rpn_f32_ref[0:4, :]
    gt_rpn_loc = rpn_f32_ref[4:8, :]
    s2 = rpn_sigma * rpn_sigma
    d = rpn_pos * (rpn_loc - gt_rpn_loc)                  # (4, A); masked rows -> exactly 0
    ad = jnp.abs(d)
    fl = (ad < (1.0 / s2)).astype(f32)
    y = fl * (s2 * 0.5) * d * d + (1.0 - fl) * (ad - 0.5 / s2)
    rpn_loc_num = jnp.sum(y, axis=0, keepdims=True)       # (1, A)

    # rpn_cos_loss numerator: F.smooth_l1_loss (beta=1) over positive-label rows.
    rpn_cos = rpn_f32_ref[8:8 + n_cos, :]
    gt_rpn_cos = rpn_f32_ref[8 + n_cos:8 + 2 * n_cos, :]
    dc = rpn_pos * (rpn_cos - gt_rpn_cos)                 # (C, A)
    adc = jnp.abs(dc)
    flc = (adc < 1.0).astype(f32)
    sl1 = flc * 0.5 * dc * dc + (1.0 - flc) * (adc - 0.5)
    rpn_cos_num = jnp.sum(sl1, axis=0, keepdims=True)     # (1, A)

    # anchor_cls_loss numerator: softmax CE with ignore_index = -1.
    logits = rpn_f32_ref[8 + 2 * n_cos:8 + 2 * n_cos + k_anchor, :]   # (K, A)
    m = jnp.max(logits, axis=0, keepdims=True)
    lse = m + jnp.log(jnp.sum(jnp.exp(logits - m), axis=0, keepdims=True))
    cls = jax.lax.broadcasted_iota(jnp.int32, logits.shape, 0)
    picked = jnp.sum((cls == anchor_label).astype(f32) * logits, axis=0, keepdims=True)
    anchor_valid = (anchor_label != -1).astype(f32)
    anchor_nll = (lse - picked) * anchor_valid            # (1, A)

    # One batched cross-lane reduction for the whole RPN side.
    rpn_stack = jnp.concatenate(
        [rpn_loc_num, rpn_valid, rpn_cos_num, rpn_pos, anchor_nll, anchor_valid], axis=0)
    rpn_red = jnp.sum(rpn_stack, axis=-1, keepdims=True)  # (6, 1)

    # ---------------- ROI head side ------------------------------------------
    roi_label = roi_lab_ref[0:1, :]                       # (1, Rp) int32 (-1 padded)
    roi_label2 = roi_lab_ref[1:2, :]                      # (1, Rp) int32 (-1 padded)
    roi_pos = (roi_label > 0).astype(f32)
    roi_valid = (roi_label >= 0).astype(f32)

    roi_loc = roi_f32_ref[0:4, :]
    gt_roi_loc = roi_f32_ref[4:8, :]
    rs2 = roi_sigma * roi_sigma
    dr = roi_pos * (roi_loc - gt_roi_loc)
    adr = jnp.abs(dr)
    flr = (adr < (1.0 / rs2)).astype(f32)
    yr = flr * (rs2 * 0.5) * dr * dr + (1.0 - flr) * (adr - 0.5 / rs2)
    roi_loc_num = jnp.sum(yr, axis=0, keepdims=True)      # (1, Rp)

    # TODO(synk): logistic_loss / focal_loss / compute_property are not defined in
    # trainer.py; roi_cls_loss is approximated with softmax CE + ignore_index=-1.
    roi_logits = roi_f32_ref[8:8 + k_roi, :]              # (K2, Rp)
    mr = jnp.max(roi_logits, axis=0, keepdims=True)
    lser = mr + jnp.log(jnp.sum(jnp.exp(roi_logits - mr), axis=0, keepdims=True))
    clsr = jax.lax.broadcasted_iota(jnp.int32, roi_logits.shape, 0)
    pickedr = jnp.sum((clsr == roi_label2).astype(f32) * roi_logits, axis=0, keepdims=True)
    roi_cls_valid = (roi_label2 != -1).astype(f32)
    roi_nll = (lser - pickedr) * roi_cls_valid            # (1, Rp)

    roi_stack = jnp.concatenate(
        [roi_loc_num, roi_valid, roi_nll, roi_cls_valid], axis=0)
    roi_red = jnp.sum(roi_stack, axis=-1, keepdims=True)  # (4, 1)

    # ---------------- Final scalar math -> contiguous SMEM writes ------------
    # NaN when a batch has no valid / positive labels (matches PyTorch mean-of-empty).
    rpn_loc_loss = rpn_red[0, 0] / rpn_red[1, 0]
    rpn_cos_loss = rpn_red[2, 0] / (rpn_red[3, 0] * float(n_cos))
    anchor_cls_loss = rpn_red[4, 0] / rpn_red[5, 0]
    roi_loc_loss = roi_red[0, 0] / roi_red[1, 0]
    roi_cls_scaled = 10.0 * roi_red[2, 0] / roi_red[3, 0]   # trainer stores 10 * roi_cls_loss

    out_ref[0] = rpn_loc_loss
    out_ref[1] = rpn_cos_loss
    out_ref[2] = anchor_cls_loss
    out_ref[3] = roi_loc_loss
    out_ref[4] = roi_cls_scaled
    out_ref[5] = (rpn_loc_loss + rpn_cos_loss + anchor_cls_loss
                  + roi_loc_loss + roi_cls_scaled)


# ----------------------------------------------------------------------------
# Wrapper: pack 12 operands into 4 lane-dense slabs, lane-pad, single pallas_call
# ----------------------------------------------------------------------------
@functools.partial(jax.jit, static_argnames=("rpn_sigma", "roi_sigma"))
def faster_rcnn_trainer_losses(
    rpn_loc, gt_rpn_loc, gt_rpn_label,
    rpn_cos, gt_rpn_cos,
    rpn_anchor_class, gt_anchor_class_label,
    roi_cls_loc, gt_roi_loc, gt_roi_label,
    roi_score, gt_roi_label2,
    rpn_sigma=3.0, roi_sigma=1.0,
):
    A = rpn_loc.shape[0]
    R = roi_cls_loc.shape[0]
    n_cos = rpn_cos.shape[1]
    k_anchor = rpn_anchor_class.shape[1]
    k_roi = roi_score.shape[1]
    a_pad = _round_up(max(A, 1), _LANE)
    r_pad = _round_up(max(R, 1), _LANE)

    # One concatenate + one transpose per f32 pack: row (anchor / ROI) axis goes
    # to the 128-wide lane axis, the tiny feature/class dims fill the sublanes.
    rpn_f32 = jnp.concatenate(
        [rpn_loc, gt_rpn_loc, rpn_cos, gt_rpn_cos, rpn_anchor_class],
        axis=1).astype(jnp.float32).T                                 # (8+2C+K, A)
    roi_f32 = jnp.concatenate(
        [roi_cls_loc, gt_roi_loc, roi_score],
        axis=1).astype(jnp.float32).T                                 # (8+K2, R)

    rpn_lab = jnp.stack(
        [jnp.asarray(gt_rpn_label, jnp.int32).reshape(-1),
         jnp.asarray(gt_anchor_class_label, jnp.int32).reshape(-1)], axis=0)   # (2, A)
    roi_lab = jnp.stack(
        [jnp.asarray(gt_roi_label, jnp.int32).reshape(-1),
         jnp.asarray(gt_roi_label2, jnp.int32).reshape(-1)], axis=0)           # (2, R)

    # Lane-pad to a multiple of 128: f32 rows with 0, labels with -1.  The pads
    # are excluded from every mask (>0, >=0, !=-1) and denominator -> exactly
    # zero contribution to every loss.
    if a_pad != A:
        rpn_f32 = jnp.pad(rpn_f32, ((0, 0), (0, a_pad - A)))
        rpn_lab = jnp.pad(rpn_lab, ((0, 0), (0, a_pad - A)), constant_values=-1)
    if r_pad != R:
        roi_f32 = jnp.pad(roi_f32, ((0, 0), (0, r_pad - R)))
        roi_lab = jnp.pad(roi_lab, ((0, 0), (0, r_pad - R)), constant_values=-1)

    kernel = functools.partial(
        _fused_loss_kernel,
        n_cos=n_cos, k_anchor=k_anchor, k_roi=k_roi,
        rpn_sigma=float(rpn_sigma), roi_sigma=float(roi_sigma))

    out = pl.pallas_call(
        kernel,
        out_shape=jax.ShapeDtypeStruct((6,), jnp.float32),
        in_specs=[_VMEM, _VMEM, _VMEM, _VMEM],
        out_specs=_SMEM,
    )(rpn_f32, rpn_lab, roi_f32, roi_lab)
    return LossTuple(out[0], out[1], out[2], out[3], out[4], out[5])


# ----------------------------------------------------------------------------
# Pure-numpy reference (same math, float64) for a correctness check
# ----------------------------------------------------------------------------
def _ref_losses(rpn_loc, gt_rpn_loc, gt_rpn_label, rpn_cos, gt_rpn_cos,
                rpn_anchor_class, gt_anchor_class_label,
                roi_cls_loc, gt_roi_loc, gt_roi_label,
                roi_score, gt_roi_label2, rpn_sigma, roi_sigma):
    def loc_loss(pred, gt, label, sigma):
        pred = np.asarray(pred, np.float64); gt = np.asarray(gt, np.float64)
        label = np.asarray(label).reshape(-1)
        pos = (label > 0).astype(np.float64)[:, None]
        sigma2 = sigma * sigma
        diff = pos * (pred - gt)
        ad = np.abs(diff)
        flag = (ad < 1.0 / sigma2).astype(np.float64)
        y = flag * (sigma2 / 2.0) * diff * diff + (1 - flag) * (ad - 0.5 / sigma2)
        return y.sum() / float((label >= 0).sum())

    def masked_sl1_mean(pred, gt, label):
        label = np.asarray(label).reshape(-1)
        sel = label > 0
        d = np.asarray(pred, np.float64)[sel] - np.asarray(gt, np.float64)[sel]
        ad = np.abs(d)
        sl1 = np.where(ad < 1.0, 0.5 * d * d, ad - 0.5)
        return sl1.mean()

    def ce_ignore(logits, label):
        logits = np.asarray(logits, np.float64)
        label = np.asarray(label).reshape(-1)
        m = logits.max(axis=1, keepdims=True)
        lse = m + np.log(np.exp(logits - m).sum(axis=1, keepdims=True))
        valid = label != -1
        idx = np.where(valid, label, 0)
        picked = logits[np.arange(logits.shape[0]), idx]
        nll = (lse[:, 0] - picked) * valid
        return nll.sum() / float(valid.sum())

    r_loc = loc_loss(rpn_loc, gt_rpn_loc, gt_rpn_label, rpn_sigma)
    r_cos = masked_sl1_mean(rpn_cos, gt_rpn_cos, gt_rpn_label)
    a_cls = ce_ignore(rpn_anchor_class, gt_anchor_class_label)
    roi_loc = loc_loss(roi_cls_loc, gt_roi_loc, gt_roi_label, roi_sigma)
    roi_cls = 10.0 * ce_ignore(roi_score, gt_roi_label2)
    total = r_loc + r_cos + a_cls + roi_loc + roi_cls
    return np.array([r_loc, r_cos, a_cls, roi_loc, roi_cls, total], np.float64)


# ----------------------------------------------------------------------------
# Demo with deterministic synthetic inputs
# ----------------------------------------------------------------------------
if __name__ == "__main__":
    # TODO(synk): the backbone/RPN/head networks, AnchorTargetCreator and
    # ProposalTargetCreator are external modules not defined in trainer.py;
    # their outputs are emulated here with random tensors of the right shapes.
    key = jax.random.PRNGKey(0)
    ks = jax.random.split(key, 12)

    A = 128   # number of anchors
    R = 32    # number of sampled ROIs (lane-padded to 128 inside the wrapper)
    K_ANCHOR_CLS = 4
    K_ROI_CLS = 2

    # RPN side
    rpn_loc = jax.random.normal(ks[0], (A, 4), jnp.float32)
    gt_rpn_loc = jax.random.normal(ks[1], (A, 4), jnp.float32)
    gt_rpn_label = jax.random.randint(ks[2], (A,), -1, 2, jnp.int32)
    gt_rpn_label = gt_rpn_label.at[:8].set(1)      # guarantee positives
    gt_rpn_label = gt_rpn_label.at[8:16].set(0)    # guarantee valid negatives

    rpn_cos = jax.random.normal(ks[3], (A, 2), jnp.float32)
    gt_rpn_cos = jax.random.normal(ks[4], (A, 2), jnp.float32)

    rpn_anchor_class = jax.random.normal(ks[5], (A, K_ANCHOR_CLS), jnp.float32)
    gt_anchor_class_label = jax.random.randint(ks[6], (A,), -1, K_ANCHOR_CLS, jnp.int32)
    gt_anchor_class_label = gt_anchor_class_label.at[:4].set(0)

    # ROI head side
    roi_cls_loc = jax.random.normal(ks[7], (R, 4), jnp.float32)
    gt_roi_loc = jax.random.normal(ks[8], (R, 4), jnp.float32)
    gt_roi_label = jax.random.randint(ks[9], (R,), 0, 2, jnp.int32)
    gt_roi_label = gt_roi_label.at[:4].set(1)

    roi_score = jax.random.normal(ks[10], (R, K_ROI_CLS), jnp.float32)
    gt_roi_label2 = jax.random.randint(ks[11], (R,), -1, K_ROI_CLS, jnp.int32)
    gt_roi_label2 = gt_roi_label2.at[:4].set(1)

    losses = faster_rcnn_trainer_losses(
        rpn_loc, gt_rpn_loc, gt_rpn_label,
        rpn_cos, gt_rpn_cos,
        rpn_anchor_class, gt_anchor_class_label,
        roi_cls_loc, gt_roi_loc, gt_roi_label,
        roi_score, gt_roi_label2,
        rpn_sigma=3.0, roi_sigma=1.0,
    )
    jax.block_until_ready(losses.total_loss)

    got = np.array([np.asarray(v) for v in losses], np.float64)
    want = _ref_losses(
        rpn_loc, gt_rpn_loc, gt_rpn_label, rpn_cos, gt_rpn_cos,
        rpn_anchor_class, gt_anchor_class_label,
        roi_cls_loc, gt_roi_loc, gt_roi_label,
        roi_score, gt_roi_label2, 3.0, 1.0)
    np.testing.assert_allclose(got, want, rtol=1e-3, atol=1e-5)

    print("KERNEL_OK")
</pallas_src>

<mosaic_0001>
module attributes {stable_mosaic.version = 11 : i64} {
  func.func @_fused_loss_kernel(%arg0: memref<16x128xf32, #tpu.memory_space<vmem>>, %arg1: memref<2x128xi32, #tpu.memory_space<vmem>>, %arg2: memref<10x128xf32, #tpu.memory_space<vmem>>, %arg3: memref<2x128xi32, #tpu.memory_space<vmem>>, %arg4: memref<6xf32, #tpu.memory_space<smem>>) attributes {dimension_semantics = [], scalar_prefetch = 0 : i64, scratch_operands = 0 : i64, tpu.core_type = #tpu.core_type<tc>} {
    %c0 = arith.constant 0 : index
    %c0_0 = arith.constant 0 : index
    %0 = vector.load %arg1[%c0, %c0_0] : memref<2x128xi32, #tpu.memory_space<vmem>>, vector<1x128xi32>
    %c1 = arith.constant 1 : index
    %c0_1 = arith.constant 0 : index
    %1 = vector.load %arg1[%c1, %c0_1] : memref<2x128xi32, #tpu.memory_space<vmem>>, vector<1x128xi32>
    %c0_i32 = arith.constant 0 : i32
    %2 = vector.broadcast %c0_i32 : i32 to vector<1x128xi32>
    %3 = arith.cmpi sgt, %0, %2 : vector<1x128xi32>
    %4 = arith.extui %3 : vector<1x128xi1> to vector<1x128xi32>
    %5 = arith.sitofp %4 : vector<1x128xi32> to vector<1x128xf32>
    %c0_i32_2 = arith.constant 0 : i32
    %6 = vector.broadcast %c0_i32_2 : i32 to vector<1x128xi32>
    %7 = arith.cmpi sge, %0, %6 : vector<1x128xi32>
    %8 = arith.extui %7 : vector<1x128xi1> to vector<1x128xi32>
    %9 = arith.sitofp %8 : vector<1x128xi32> to vector<1x128xf32>
    %c0_3 = arith.constant 0 : index
    %c0_4 = arith.constant 0 : index
    %10 = vector.load %arg0[%c0_3, %c0_4] : memref<16x128xf32, #tpu.memory_space<vmem>>, vector<4x128xf32>
    %c4 = arith.constant 4 : index
    %c0_5 = arith.constant 0 : index
    %11 = vector.load %arg0[%c4, %c0_5] : memref<16x128xf32, #tpu.memory_space<vmem>>, vector<4x128xf32>
    %12 = arith.subf %10, %11 : vector<4x128xf32>
    %13 = vector.broadcast %5 : vector<1x128xf32> to vector<4x128xf32>
    %14 = arith.mulf %13, %12 : vector<4x128xf32>
    %15 = math.absf %14 : vector<4x128xf32>
    %cst = arith.constant 0.111111112 : f32
    %16 = vector.broadcast %cst : f32 to vector<4x128xf32>
    %17 = arith.cmpf olt, %15, %16 : vector<4x128xf32>
    %18 = arith.extui %17 : vector<4x128xi1> to vector<4x128xi32>
    %19 = arith.sitofp %18 : vector<4x128xi32> to vector<4x128xf32>
    %cst_6 = arith.constant 4.500000e+00 : f32
    %20 = vector.broadcast %cst_6 : f32 to vector<4x128xf32>
    %21 = arith.mulf %19, %20 : vector<4x128xf32>
    %22 = arith.mulf %21, %14 : vector<4x128xf32>
    %23 = arith.mulf %22, %14 : vector<4x128xf32>
    %cst_7 = arith.constant 1.000000e+00 : f32
    %24 = vector.broadcast %cst_7 : f32 to vector<4x128xf32>
    %25 = arith.subf %24, %19 : vector<4x128xf32>
    %cst_8 = arith.constant 0.055555556 : f32
    %26 = vector.broadcast %cst_8 : f32 to vector<4x128xf32>
    %27 = arith.subf %15, %26 : vector<4x128xf32>
    %28 = arith.mulf %25, %27 : vector<4x128xf32>
    %29 = arith.addf %23, %28 : vector<4x128xf32>
    %cst_9 = arith.constant dense<0.000000e+00> : vector<128xf32>
    %30 = vector.multi_reduction <add>, %29, %cst_9 [0] : vector<4x128xf32> to vector<128xf32>
    %31 = vector.shape_cast %30 : vector<128xf32> to vector<1x128xf32>
    %c8 = arith.constant 8 : index
    %c0_10 = arith.constant 0 : index
    %32 = vector.load %arg0[%c8, %c0_10] : memref<16x128xf32, #tpu.memory_space<vmem>>, vector<2x128xf32>
    %c10 = arith.constant 10 : index
    %c0_11 = arith.constant 0 : index
    %33 = vector.load %arg0[%c10, %c0_11] : memref<16x128xf32, #tpu.memory_space<vmem>>, vector<2x128xf32>
    %34 = arith.subf %32, %33 : vector<2x128xf32>
    %35 = vector.broadcast %5 : vector<1x128xf32> to vector<2x128xf32>
    %36 = arith.mulf %35, %34 : vector<2x128xf32>
    %37 = math.absf %36 : vector<2x128xf32>
    %cst_12 = arith.constant 1.000000e+00 : f32
    %38 = vector.broadcast %cst_12 : f32 to vector<2x128xf32>
    %39 = arith.cmpf olt, %37, %38 : vector<2x128xf32>
    %40 = arith.extui %39 : vector<2x128xi1> to vector<2x128xi32>
    %41 = arith.sitofp %40 : vector<2x128xi32> to vector<2x128xf32>
    %cst_13 = arith.constant 5.000000e-01 : f32
    %42 = vector.broadcast %cst_13 : f32 to vector<2x128xf32>
    %43 = arith.mulf %41, %42 : vector<2x128xf32>
    %44 = arith.mulf %43, %36 : vector<2x128xf32>
    %45 = arith.mulf %44, %36 : vector<2x128xf32>
    %cst_14 = arith.constant 1.000000e+00 : f32
    %46 = vector.broadcast %cst_14 : f32 to vector<2x128xf32>
    %47 = arith.subf %46, %41 : vector<2x128xf32>
    %cst_15 = arith.constant 5.000000e-01 : f32
    %48 = vector.broadcast %cst_15 : f32 to vector<2x128xf32>
    %49 = arith.subf %37, %48 : vector<2x128xf32>
    %50 = arith.mulf %47, %49 : vector<2x128xf32>
    %51 = arith.addf %45, %50 : vector<2x128xf32>
    %cst_16 = arith.constant dense<0.000000e+00> : vector<128xf32>
    %52 = vector.multi_reduction <add>, %51, %cst_16 [0] : vector<2x128xf32> to vector<128xf32>
    %53 = vector.shape_cast %52 : vector<128xf32> to vector<1x128xf32>
    %c12 = arith.constant 12 : index
    %c0_17 = arith.constant 0 : index
    %54 = vector.load %arg0[%c12, %c0_17] : memref<16x128xf32, #tpu.memory_space<vmem>>, vector<4x128xf32>
    %cst_18 = arith.constant dense<0xFF800000> : vector<128xf32>
    %55 = vector.multi_reduction <maximumf>, %54, %cst_18 [0] : vector<4x128xf32> to vector<128xf32>
    %56 = vector.shape_cast %55 : vector<128xf32> to vector<1x128xf32>
    %57 = vector.broadcast %56 : vector<1x128xf32> to vector<4x128xf32>
    %58 = arith.subf %54, %57 : vector<4x128xf32>
    %59 = math.exp %58 : vector<4x128xf32>
    %cst_19 = arith.constant dense<0.000000e+00> : vector<128xf32>
    %60 = vector.multi_reduction <add>, %59, %cst_19 [0] : vector<4x128xf32> to vector<128xf32>
    %61 = vector.shape_cast %60 : vector<128xf32> to vector<1x128xf32>
    %62 = math.log %61 : vector<1x128xf32>
    %63 = arith.addf %56, %62 : vector<1x128xf32>
    %64 = tpu.iota {dimensions = array<i32: 0>} : vector<4x128xi32>
    %65 = vector.broadcast %1 : vector<1x128xi32> to vector<4x128xi32>
    %66 = arith.cmpi eq, %64, %65 : vector<4x128xi32>
    %67 = arith.extui %66 : vector<4x128xi1> to vector<4x128xi32>
    %68 = arith.sitofp %67 : vector<4x128xi32> to vector<4x128xf32>
    %69 = arith.mulf %68, %54 : vector<4x128xf32>
    %cst_20 = arith.constant dense<0.000000e+00> : vector<128xf32>
    %70 = vector.multi_reduction <add>, %69, %cst_20 [0] : vector<4x128xf32> to vector<128xf32>
    %71 = vector.shape_cast %70 : vector<128xf32> to vector<1x128xf32>
    %c-1_i32 = arith.constant -1 : i32
    %72 = vector.broadcast %c-1_i32 : i32 to vector<1x128xi32>
    %73 = arith.cmpi ne, %1, %72 : vector<1x128xi32>
    %74 = arith.extui %73 : vector<1x128xi1> to vector<1x128xi32>
    %75 = arith.sitofp %74 : vector<1x128xi32> to vector<1x128xf32>
    %76 = arith.subf %63, %71 : vector<1x128xf32>
    %77 = arith.mulf %76, %75 : vector<1x128xf32>
    %78 = tpu.concatenate %31, %9, %53, %5, %77, %75 in 0 : vector<1x128xf32>, vector<1x128xf32>, vector<1x128xf32>, vector<1x128xf32>, vector<1x128xf32>, vector<1x128xf32> -> vector<6x128xf32>
    %cst_21 = arith.constant dense<0.000000e+00> : vector<6xf32>
    %79 = vector.multi_reduction <add>, %78, %cst_21 [1] : vector<6x128xf32> to vector<6xf32>
    %80 = vector.shape_cast %79 : vector<6xf32> to vector<6x1xf32>
    %c0_22 = arith.constant 0 : index
    %c0_23 = arith.constant 0 : index
    %81 = vector.load %arg3[%c0_22, %c0_23] : memref<2x128xi32, #tpu.memory_space<vmem>>, vector<1x128xi32>
    %c1_24 = arith.constant 1 : index
    %c0_25 = arith.constant 0 : index
    %82 = vector.load %arg3[%c1_24, %c0_25] : memref<2x128xi32, #tpu.memory_space<vmem>>, vector<1x128xi32>
    %c0_i32_26 = arith.constant 0 : i32
    %83 = vector.broadcast %c0_i32_26 : i32 to vector<1x128xi32>
    %84 = arith.cmpi sgt, %81, %83 : vector<1x128xi32>
    %85 = arith.extui %84 : vector<1x128xi1> to vector<1x128xi32>
    %86 = arith.sitofp %85 : vector<1x128xi32> to vector<1x128xf32>
    %c0_i32_27 = arith.constant 0 : i32
    %87 = vector.broadcast %c0_i32_27 : i32 to vector<1x128xi32>
    %88 = arith.cmpi sge, %81, %87 : vector<1x128xi32>
    %89 = arith.extui %88 : vector<1x128xi1> to vector<1x128xi32>
    %90 = arith.sitofp %89 : vector<1x128xi32> to vector<1x128xf32>
    %c0_28 = arith.constant 0 : index
    %c0_29 = arith.constant 0 : index
    %91 = vector.load %arg2[%c0_28, %c0_29] : memref<10x128xf32, #tpu.memory_space<vmem>>, vector<4x128xf32>
    %c4_30 = arith.constant 4 : index
    %c0_31 = arith.constant 0 : index
    %92 = vector.load %arg2[%c4_30, %c0_31] : memref<10x128xf32, #tpu.memory_space<vmem>>, vector<4x128xf32>
    %93 = arith.subf %91, %92 : vector<4x128xf32>
    %94 = vector.broadcast %86 : vector<1x128xf32> to vector<4x128xf32>
    %95 = arith.mulf %94, %93 : vector<4x128xf32>
    %96 = math.absf %95 : vector<4x128xf32>
    %cst_32 = arith.constant 1.000000e+00 : f32
    %97 = vector.broadcast %cst_32 : f32 to vector<4x128xf32>
    %98 = arith.cmpf olt, %96, %97 : vector<4x128xf32>
    %99 = arith.extui %98 : vector<4x128xi1> to vector<4x128xi32>
    %100 = arith.sitofp %99 : vector<4x128xi32> to vector<4x128xf32>
    %cst_33 = arith.constant 5.000000e-01 : f32
    %101 = vector.broadcast %cst_33 : f32 to vector<4x128xf32>
    %102 = arith.mulf %100, %101 : vector<4x128xf32>
    %103 = arith.mulf %102, %95 : vector<4x128xf32>
    %104 = arith.mulf %103, %95 : vector<4x128xf32>
    %cst_34 = arith.constant 1.000000e+00 : f32
    %105 = vector.broadcast %cst_34 : f32 to vector<4x128xf32>
    %106 = arith.subf %105, %100 : vector<4x128xf32>
    %cst_35 = arith.constant 5.000000e-01 : f32
    %107 = vector.broadcast %cst_35 : f32 to vector<4x128xf32>
    %108 = arith.subf %96, %107 : vector<4x128xf32>
    %109 = arith.mulf %106, %108 : vector<4x128xf32>
    %110 = arith.addf %104, %109 : vector<4x128xf32>
    %cst_36 = arith.constant dense<0.000000e+00> : vector<128xf32>
    %111 = vector.multi_reduction <add>, %110, %cst_36 [0] : vector<4x128xf32> to vector<128xf32>
    %112 = vector.shape_cast %111 : vector<128xf32> to vector<1x128xf32>
    %c8_37 = arith.constant 8 : index
    %c0_38 = arith.constant 0 : index
    %113 = vector.load %arg2[%c8_37, %c0_38] : memref<10x128xf32, #tpu.memory_space<vmem>>, vector<2x128xf32>
    %cst_39 = arith.constant dense<0xFF800000> : vector<128xf32>
    %114 = vector.multi_reduction <maximumf>, %113, %cst_39 [0] : vector<2x128xf32> to vector<128xf32>
    %115 = vector.shape_cast %114 : vector<128xf32> to vector<1x128xf32>
    %116 = vector.broadcast %115 : vector<1x128xf32> to vector<2x128xf32>
    %117 = arith.subf %113, %116 : vector<2x128xf32>
    %118 = math.exp %117 : vector<2x128xf32>
    %cst_40 = arith.constant dense<0.000000e+00> : vector<128xf32>
    %119 = vector.multi_reduction <add>, %118, %cst_40 [0] : vector<2x128xf32> to vector<128xf32>
    %120 = vector.shape_cast %119 : vector<128xf32> to vector<1x128xf32>
    %121 = math.log %120 : vector<1x128xf32>
    %122 = arith.addf %115, %121 : vector<1x128xf32>
    %123 = tpu.iota {dimensions = array<i32: 0>} : vector<2x128xi32>
    %124 = vector.broadcast %82 : vector<1x128xi32> to vector<2x128xi32>
    %125 = arith.cmpi eq, %123, %124 : vector<2x128xi32>
    %126 = arith.extui %125 : vector<2x128xi1> to vector<2x128xi32>
    %127 = arith.sitofp %126 : vector<2x128xi32> to vector<2x128xf32>
    %128 = arith.mulf %127, %113 : vector<2x128xf32>
    %cst_41 = arith.constant dense<0.000000e+00> : vector<128xf32>
    %129 = vector.multi_reduction <add>, %128, %cst_41 [0] : vector<2x128xf32> to vector<128xf32>
    %130 = vector.shape_cast %129 : vector<128xf32> to vector<1x128xf32>
    %c-1_i32_42 = arith.constant -1 : i32
    %131 = vector.broadcast %c-1_i32_42 : i32 to vector<1x128xi32>
    %132 = arith.cmpi ne, %82, %131 : vector<1x128xi32>
    %133 = arith.extui %132 : vector<1x128xi1> to vector<1x128xi32>
    %134 = arith.sitofp %133 : vector<1x128xi32> to vector<1x128xf32>
    %135 = arith.subf %122, %130 : vector<1x128xf32>
    %136 = arith.mulf %135, %134 : vector<1x128xf32>
    %137 = tpu.concatenate %112, %90, %136, %134 in 0 : vector<1x128xf32>, vector<1x128xf32>, vector<1x128xf32>, vector<1x128xf32> -> vector<4x128xf32>
    %cst_43 = arith.constant dense<0.000000e+00> : vector<4xf32>
    %138 = vector.multi_reduction <add>, %137, %cst_43 [1] : vector<4x128xf32> to vector<4xf32>
    %139 = vector.shape_cast %138 : vector<4xf32> to vector<4x1xf32>
    %140 = vector.extract_strided_slice %80 {offsets = [0, 0], sizes = [1, 1], strides = [1, 1]} : vector<6x1xf32> to vector<1x1xf32>
    %141 = vector.extract %140[0, 0] : f32 from vector<1x1xf32>
    %142 = vector.extract_strided_slice %80 {offsets = [1, 0], sizes = [1, 1], strides = [1, 1]} : vector<6x1xf32> to vector<1x1xf32>
    %143 = vector.extract %142[0, 0] : f32 from vector<1x1xf32>
    %144 = arith.divf %141, %143 : f32
    %145 = vector.extract_strided_slice %80 {offsets = [2, 0], sizes = [1, 1], strides = [1, 1]} : vector<6x1xf32> to vector<1x1xf32>
    %146 = vector.extract %145[0, 0] : f32 from vector<1x1xf32>
    %147 = vector.extract_strided_slice %80 {offsets = [3, 0], sizes = [1, 1], strides = [1, 1]} : vector<6x1xf32> to vector<1x1xf32>
    %148 = vector.extract %147[0, 0] : f32 from vector<1x1xf32>
    %cst_44 = arith.constant 2.000000e+00 : f32
    %149 = arith.mulf %148, %cst_44 : f32
    %150 = arith.divf %146, %149 : f32
    %151 = vector.extract_strided_slice %80 {offsets = [4, 0], sizes = [1, 1], strides = [1, 1]} : vector<6x1xf32> to vector<1x1xf32>
    %152 = vector.extract %151[0, 0] : f32 from vector<1x1xf32>
    %153 = vector.extract_strided_slice %80 {offsets = [5, 0], sizes = [1, 1], strides = [1, 1]} : vector<6x1xf32> to vector<1x1xf32>
    %154 = vector.extract %153[0, 0] : f32 from vector<1x1xf32>
    %155 = arith.divf %152, %154 : f32
    %156 = vector.extract_strided_slice %139 {offsets = [0, 0], sizes = [1, 1], strides = [1, 1]} : vector<4x1xf32> to vector<1x1xf32>
    %157 = vector.extract %156[0, 0] : f32 from vector<1x1xf32>
    %158 = vector.extract_strided_slice %139 {offsets = [1, 0], sizes = [1, 1], strides = [1, 1]} : vector<4x1xf32> to vector<1x1xf32>
    %159 = vector.extract %158[0, 0] : f32 from vector<1x1xf32>
    %160 = arith.divf %157, %159 : f32
    %161 = vector.extract_strided_slice %139 {offsets = [2, 0], sizes = [1, 1], strides = [1, 1]} : vector<4x1xf32> to vector<1x1xf32>
    %162 = vector.extract %161[0, 0] : f32 from vector<1x1xf32>
    %cst_45 = arith.constant 1.000000e+01 : f32
    %163 = arith.mulf %cst_45, %162 : f32
    %164 = vector.extract_strided_slice %139 {offsets = [3, 0], sizes = [1, 1], strides = [1, 1]} : vector<4x1xf32> to vector<1x1xf32>
    %165 = vector.extract %164[0, 0] : f32 from vector<1x1xf32>
    %166 = arith.divf %163, %165 : f32
    %c0_46 = arith.constant 0 : index
    %167 = memref.load %arg4[%c0_46] : memref<6xf32, #tpu.memory_space<smem>>
    memref.store %144, %arg4[%c0_46] : memref<6xf32, #tpu.memory_space<smem>>
    %c1_47 = arith.constant 1 : index
    %168 = memref.load %arg4[%c1_47] : memref<6xf32, #tpu.memory_space<smem>>
    memref.store %150, %arg4[%c1_47] : memref<6xf32, #tpu.memory_space<smem>>
    %c2 = arith.constant 2 : index
    %169 = memref.load %arg4[%c2] : memref<6xf32, #tpu.memory_space<smem>>
    memref.store %155, %arg4[%c2] : memref<6xf32, #tpu.memory_space<smem>>
    %c3 = arith.constant 3 : index
    %170 = memref.load %arg4[%c3] : memref<6xf32, #tpu.memory_space<smem>>
    memref.store %160, %arg4[%c3] : memref<6xf32, #tpu.memory_space<smem>>
    %c4_48 = arith.constant 4 : index
    %171 = memref.load %arg4[%c4_48] : memref<6xf32, #tpu.memory_space<smem>>
    memref.store %166, %arg4[%c4_48] : memref<6xf32, #tpu.memory_space<smem>>
    %172 = arith.addf %144, %150 : f32
    %173 = arith.addf %172, %155 : f32
    %174 = arith.addf %173, %160 : f32
    %175 = arith.addf %174, %166 : f32
    %c5 = arith.constant 5 : index
    %176 = memref.load %arg4[%c5] : memref<6xf32, #tpu.memory_space<smem>>
    memref.store %175, %arg4[%c5] : memref<6xf32, #tpu.memory_space<smem>>
    return
  }
}

</mosaic_0001>

<bundles_post_ra>
// kernel: faster_rcnn_trainer_losses.1
= control target key start
LH: loop header
LB: loop body
LE: loop exit
PB: predicated region body
PF: predicated region fallthrough
CT: control target
= control target key end

     0   :  { %v29_v1 = vlaneseq  ;;  %vm45_vm1 = vcmask 1043456   ;;  %v382_v6 = vmov 0.0   ;;  %s503_s0 = inlined_call_operand.vmem [shape: f32[16,128], index: 0, kind: input, shape index: {}]   ;;  %s504_s1 = inlined_call_operand.vmem [shape: s32[2,128], index: 1, kind: input, shape index: {}]   ;;  %s505_s2 = inlined_call_operand.vmem [shape: f32[10,128], index: 2, kind: input, shape index: {}]   ;;  %s506_s3 = inlined_call_operand.vmem [shape: s32[2,128], index: 3, kind: input, shape index: {}]   ;;  %s507_s4 = inlined_call_operand.vmem [shape: f32[6], index: 4, kind: output, shape index: {}]  }
   0x1   :  { %v412_v0 = vld [vmem:[%s504_s1] sm:$0x1]  ;;  %v27_v3 = vld [vmem:[%s503_s0 + $0x4] sm:$0xf]  ;;  %v53_v5 = vld [vmem:[%s503_s0 + $0x8] sm:$0x3] }
   0x2   :  { %vm20_vm0 = vcmp.gt.s32.totalorder %v412_v0, 0  ;;  %v26_v2 = vld [vmem:[%s503_s0] sm:$0xf]  ;;  %v421_v4 = vshrl.u32 %v29_v1, 7  ;;  %v54_v8 = vld [vmem:[%s503_s0 + $0xa] sm:$0x3] }
   0x3   :  { %v427_v7 = vsel %vm20_vm0, 1.0, %v382_v6  ;;  %v76_v9 = vld [vmem:[%s503_s0 + $0xc] sm:$0xf]  ;;  %v28_v10 = vsub.f32 %v26_v2, %v27_v3 }
   0x4   :  { %v436_v11 = vsub.s32 0, %v421_v4  ;;  %v77_v12 = vsel %vm45_vm1, %v76_v9, -inf }
   0x5   :  { %9 = vsyncpa [#allocation3], 0  ;;  %v55_v13 = vsub.f32 %v53_v5, %v54_v8  ;;  %v78_v14 = vrot.slane %v77_v12, 4  ;;  %v19_v30 = vld [vmem:[%s504_s1 + $0x1] sm:$0x1]  ;;  %vm68_vm5 = vcmask 1041408  }
   0x6   :  { %v32_v15 = vrot.slane %v427_v7, %v436_v11  ;;  %v102_v35 = vrot.slane %v19_v30, %v436_v11  ;;  %vm23_vm6 = vcmp.ge.s32.totalorder %v412_v0, 0  ;;  %vm131_vm7 = vcmask 1040384   ;;  %s295_s7 = sshll.u32 %s507_s4, 4  ;;  %s296_s7 = int_to_ptr.vmem [resolvable:$true] %s295_s7 }
   0x7   :  { %v79_v16 = vmax.f32 %v77_v12, %v78_v14  ;;  %v305_v12 = vsel %vm23_vm6, 1.0, %v382_v6  ;;  %vm114_vm8 = vcmp.ne.s32.totalorder %v19_v30, 4294967295  ;;  %vm134_vm9 = vcmask 1042432   ;;  %s368_s10 = scalar_lea.vmem %s296_s7, 16  ;;  %p373_p1 = scmp.lt.s32.totalorder %s296_s7, %s296_s7 }
   0x8   :  { %v33_v17 = vmul.f32 %v32_v15, %v28_v10  ;;  %v56_v18 = vmul.f32 %v55_v13, %v32_v15  ;;  %vm103_vm4 = vcmp.eq.s32.totalorder %v421_v4, %v102_v35  ;;  %v311_v0 = vsel %vm114_vm8, 1.0, %v382_v6  ;;  %p369_p0 = scmp.ne.s32.totalorder %s296_s7, %s368_s10  ;;  %p374_p2 = scmp.lt.s32.totalorder %s368_s10, %s368_s10 }
   0x9   :  { %v80_v19 = vrot.slane %v79_v16, 2  ;;  %v310_v44 = vsel %vm103_vm4, 1.0, %v382_v6  ;;  %vm137_vm10 = vcmask 1044480   ;;  %vm139_vm11 = vcmask 1045504  }
   0xa   :  { %v34_v20 = vand.u32 2147483647, %v33_v17  ;;  %v57_v22 = vand.u32 2147483647, %v56_v18  ;;  %v106_v48 = vmul.f32 %v310_v44, %v76_v9  ;;  %p375_p3 = por %p374_p2, %p373_p1 }
   0xb   :  { %v81_v21 = vmax.f32 %v79_v16, %v80_v19  ;;  %v120_v16 = vrot.slane %v305_v12, 7 }
   0xc   :  { %vm35_vm2 = vcmp.lt.f32.partialorder %v34_v20, 0.11111111  ;;  %vm58_vm3 = vcmp.lt.f32.partialorder %v57_v22, 1.0  ;;  %v307_v34 = vadd.f32 -0.055555556, %v34_v20  ;;  %v309_v38 = vadd.f32 -0.5, %v57_v22  ;;  %p376_p4 = pnand %p375_p3, %p369_p0 }
   0xd   :  { %v82_v23 = vrot.slane %v81_v21, 1  ;;  %v306_v25 = vsel %vm35_vm2, 1.0, %v382_v6  ;;  %v308_v29 = vsel %vm58_vm3, 1.0, %v382_v6  ;;  %v107_v54 = vsel %vm45_vm1, %v106_v48, 0.0 }
   0xe   :  { %v38_v28 = vmul.f32 4.5, %v306_v25  ;;  %v61_v31 = vmul.f32 0.5, %v308_v29  ;;  %v41_v33 = vsub.f32 1.0, %v306_v25  ;;  %v64_v37 = vsub.f32 1.0, %v308_v29 }
   0xf   :  { %v441_v24 = vmax.f32 %v81_v21, %v82_v23  ;;  %v108_v58 = vrot.slane %v107_v54, 4  ;;  %v123_v23 = vrot.slane %v427_v7, 5 }
  0x10   :  { %v39_v32 = vmul.f32 %v38_v28, %v33_v17  ;;  %v62_v36 = vmul.f32 %v61_v31, %v56_v18  ;;  %v43_v40 = vmul.f32 %v307_v34, %v41_v33  ;;  %v66_v42 = vmul.f32 %v309_v38, %v64_v37 }
  0x11   :  { %v84_v26 = vsub.f32 %v76_v9, %v441_v24  ;;  %v109_v63 = vadd.f32 %v108_v58, %v107_v54  ;;  %v129_v28 = vrot.slane %v311_v0, 3 }
  0x12   :  { %v40_v39 = vmul.f32 %v39_v32, %v33_v17  ;;  %v63_v41 = vmul.f32 %v62_v36, %v56_v18 }
  0x13   :  { %v85_v27 = vmul.f32 1.442695, %v84_v26  ;;  %v110_v3 = vrot.slane %v109_v63, 2 }
  0x14   :  { %v44_v43 = vadd.f32 %v43_v40, %v40_v39  ;;  %v67_v46 = vadd.f32 %v66_v42, %v63_v41 }
  0x15   :  { %350 = vpow2.f32 %v85_v27  ;;  %v111_v9 = vadd.f32 %v110_v3, %v109_v63 }
  0x16   :  { %v46_v49 = vsel %vm45_vm1, %v44_v43, 0.0  ;;  %v69_v53 = vsel %vm68_vm5, %v67_v46, 0.0  ;;  %v143_v46 = vld [vmem:[%s506_s3] sm:$0x1] }
  0x17   :  { %v47_v52 = vrot.slane %v46_v49, 4  ;;  %v70_v56 = vrot.slane %v69_v53, 4  ;;  %v112_v14 = vrot.slane %v111_v9, 1  ;;  %vm145_vm12 = vcmp.gt.s32.totalorder %v143_v46, 0 }
  0x18   :  { %v312_v48 = vsel %vm145_vm12, 1.0, %v382_v6  ;;  %vm148_vm0 = vcmp.ge.s32.totalorder %v143_v46, 0 }
  0x19   :  { %v48_v59 = vadd.f32 %v47_v52, %v46_v49  ;;  %v71_v61 = vadd.f32 %v70_v56, %v69_v53  ;;  %v113_v20 = vadd.f32 %v112_v14, %v111_v9  ;;  %v151_v49 = vld [vmem:[%s505_s2] sm:$0xf]  ;;  %v157_v52 = vrot.slane %v312_v48, %v436_v11 }
  0x1a   :  { %v144_v56 = vld [vmem:[%s506_s3 + $0x1] sm:$0x1] }
  0x1b   :  { %v49_v1 = vrot.slane %v48_v59, 2  ;;  %v72_v2 = vrot.slane %v71_v61, 2  ;;  %vm213_vm15 = vcmp.ne.s32.totalorder %v144_v56, 4294967295 }
  0x1d   :  { %v50_v5 = vadd.f32 %v49_v1, %v48_v59  ;;  %v73_v8 = vadd.f32 %v72_v2, %v71_v61  ;;  %v201_v59 = vrot.slane %v144_v56, %v436_v11 }
  0x1f   :  { %v51_v10 = vrot.slane %v50_v5, 1  ;;  %v74_v13 = vrot.slane %v73_v8, 1  ;;  %vm202_vm14 = vcmp.eq.s32.totalorder %v421_v4, %v201_v59 }
  0x21   :  { %v52_v15 = vadd.f32 %v51_v10, %v50_v5  ;;  %v75_v18 = vadd.f32 %v74_v13, %v73_v8 }
  0x22   :  { %v351_v45 = vpop.eup %350 }
  0x23   :  { %v87_v47 = vsel %vm45_vm1, %v351_v45, 0.0  ;;  %v132_v21 = vsel %vm131_vm7, %v52_v15, %v120_v16 }
  0x24   :  { %v88_v50 = vrot.slane %v87_v47, 4  ;;  %v133_v26 = vsel %vm68_vm5, %v132_v21, %v75_v18 }
  0x25   :  { %v135_v29 = vsel %vm134_vm9, %v133_v26, %v123_v23  ;;  %v317_v26 = vsel %vm213_vm15, 1.0, %v382_v6 }
  0x26   :  { %v89_v51 = vadd.f32 %v88_v50, %v87_v47  ;;  %v152_v50 = vld [vmem:[%s505_s2 + $0x4] sm:$0xf] }
  0x28   :  { %v90_v55 = vrot.slane %v89_v51, 2 }
  0x2a   :  { %v91_v57 = vadd.f32 %v90_v55, %v89_v51  ;;  %v153_v51 = vsub.f32 %v151_v49, %v152_v50 }
  0x2c   :  { %v92_v60 = vrot.slane %v91_v57, 1  ;;  %v158_v54 = vmul.f32 %v157_v52, %v153_v51 }
  0x2e   :  { %v93_v62 = vadd.f32 %v92_v60, %v91_v57  ;;  %v159_v57 = vand.u32 2147483647, %v158_v54 }
  0x30   :  { %352 = vlog2.f32 %v93_v62  ;;  %vm160_vm13 = vcmp.lt.f32.partialorder %v159_v57, 1.0  ;;  %v316_v62 = vsel %vm202_vm14, 1.0, %v382_v6  ;;  %v315_v3 = vadd.f32 -0.5, %v159_v57 }
  0x31   :  { %v314_v60 = vsel %vm160_vm13, 1.0, %v382_v6 }
  0x32   :  { %v163_v61 = vmul.f32 0.5, %v314_v60  ;;  %v166_v2 = vsub.f32 1.0, %v314_v60 }
  0x34   :  { %v164_v1 = vmul.f32 %v163_v61, %v158_v54  ;;  %v168_v9 = vmul.f32 %v315_v3, %v166_v2 }
  0x36   :  { %v165_v8 = vmul.f32 %v164_v1, %v158_v54 }
  0x38   :  { %v169_v12 = vadd.f32 %v168_v9, %v165_v8 }
  0x3a   :  { %v170_v13 = vsel %vm45_vm1, %v169_v12, 0.0 }
  0x3b   :  { %v171_v15 = vrot.slane %v170_v13, 4 }
  0x3d   :  { %v353_v17 = vpop.eup %352 }
  0x3e   :  { %v95_v19 = vmul.f32 0.6931472, %v353_v17  ;;  %v172_v17 = vadd.f32 %v171_v15, %v170_v13 }
  0x40   :  { %v96_v22 = vadd.f32 %v95_v19, %v441_v24  ;;  %v177_v24 = vld [vmem:[%s505_s2 + $0x8] sm:$0x3] }
  0x41   :  { %v178_v7 = vsel %vm68_vm5, %v177_v24, -inf  ;;  %v205_v63 = vmul.f32 %v316_v62, %v177_v24 }
  0x42   :  { %v117_v25 = vsub.f32 %v96_v22, %v113_v20  ;;  %v179_v34 = vrot.slane %v178_v7, 4  ;;  %v173_v20 = vrot.slane %v172_v17, 2 }
  0x43   :  { %v206_v5 = vsel %vm68_vm5, %v205_v63, 0.0 }
  0x44   :  { %v118_v27 = vmul.f32 %v311_v0, %v117_v25  ;;  %v180_v35 = vmax.f32 %v178_v7, %v179_v34  ;;  %v207_v10 = vrot.slane %v206_v5, 4  ;;  %v174_v0 = vadd.f32 %v173_v20, %v172_v17 }
  0x46   :  { %v126_v31 = vrot.slane %v118_v27, 4  ;;  %v181_v36 = vrot.slane %v180_v35, 2  ;;  %v208_v11 = vadd.f32 %v207_v10, %v206_v5  ;;  %v175_v25 = vrot.slane %v174_v0, 1 }
  0x47   :  { %v313_v27 = vsel %vm148_vm0, 1.0, %v382_v6 }
  0x48   :  { %v136_v30 = vsel %vm45_vm1, %v135_v29, %v126_v31  ;;  %v182_v37 = vmax.f32 %v180_v35, %v181_v36  ;;  %v209_v14 = vrot.slane %v208_v11, 2  ;;  %v176_v29 = vadd.f32 %v175_v25, %v174_v0 }
  0x49   :  { %v138_v32 = vsel %vm137_vm10, %v136_v30, %v129_v28  ;;  %v219_v31 = vrot.slane %v313_v27, 7  ;;  %v225_v30 = vrot.slane %v317_v26, 5 }
  0x4a   :  { %v140_v33 = vsel %vm139_vm11, %v138_v32, 0.0  ;;  %v183_v38 = vrot.slane %v182_v37, 1  ;;  %v210_v16 = vadd.f32 %v209_v14, %v208_v11 }
  0x4b   :  { %141 = vadd.xlane.f32.xlu0 %v140_v33  ;;  %v227_v32 = vsel %vm131_vm7, %v176_v29, %v219_v31 }
  0x4c   :  { %v184_v39 = vmax.f32 %v182_v37, %v183_v38  ;;  %v211_v19 = vrot.slane %v210_v16, 1 }
  0x4e   :  { %v185_v40 = vsub.f32 %v177_v24, %v184_v39  ;;  %v212_v22 = vadd.f32 %v211_v19, %v210_v16 }
  0x50   :  { %v186_v41 = vmul.f32 1.442695, %v185_v40 }
  0x52   :  { %354 = vpow2.f32 %v186_v41 }
  0x5f   :  { %v355_v42 = vpop.eup %354 }
  0x60   :  { %v188_v43 = vsel %vm68_vm5, %v355_v42, 0.0 }
  0x61   :  { %v189_v44 = vrot.slane %v188_v43, 4 }
  0x63   :  { %v190_v45 = vadd.f32 %v189_v44, %v188_v43 }
  0x65   :  { %v191_v47 = vrot.slane %v190_v45, 2 }
  0x67   :  { %v192_v53 = vadd.f32 %v191_v47, %v190_v45 }
  0x69   :  { %v193_v55 = vrot.slane %v192_v53, 1 }
  0x6b   :  { %v194_v58 = vadd.f32 %v193_v55, %v192_v53 }
  0x6d   :  { %356 = vlog2.f32 %v194_v58 }
  0x7a   :  { %v357_v4 = vpop.eup %356 }
  0x7b   :  { %v196_v18 = vmul.f32 0.6931472, %v357_v4 }
  0x7d   :  { %v197_v21 = vadd.f32 %v196_v18, %v184_v39 }
  0x7f   :  { %v216_v23 = vsub.f32 %v197_v21, %v212_v22 }
  0x81   :  { %v217_v28 = vmul.f32 %v317_v26, %v216_v23 }
  0x83   :  { %v222_v24 = vrot.slane %v217_v28, 6 }
  0x85   :  { %v228_v7 = vsel %vm68_vm5, %v227_v32, %v222_v24 }
  0x86   :  { %v229_v33 = vsel %vm134_vm9, %v228_v7, %v225_v30 }
  0x87   :  { %v230_v34 = vsel %vm45_vm1, %v229_v33, 0.0 }
  0x88   :  { %231 = vadd.xlane.f32.xlu0 %v230_v34 }
  0xd4   :  { %v142_v35 = vpop.xlane.xlu0 %141 }
  0xd5   :  { %318 = vpush %v142_v35  ;;  %v234_v36 = vrot.slane %v142_v35, 1  ;;  %v240_v38 = vrot.slane %v142_v35, 2  ;;  %v242_v39 = vrot.slane %v142_v35, 3  ;;  %v249_v42 = vrot.slane %v142_v35, 4 }
  0xd6   :  { %v251_v43 = vrot.slane %v142_v35, 5 }
  0xd7   :  { %320 = vpush %v234_v36 }
 0x106   :  { %s319_s2 = spop %318 }
 0x108   :  { %s321_s3 = spop %320 }
 0x109   :  { %v236_v6 = vstv %s321_s3 }
 0x10a   :  { %358 = vrcp.f32 %v236_v6 }
 0x111   :  { %v232_v45 = vpop.xlane.xlu0 %231 }
 0x112   :  { %v258_v46 = vrot.slane %v232_v45, 1  ;;  %v264_v50 = vrot.slane %v232_v45, 2  ;;  %v267_v51 = vrot.slane %v232_v45, 3 }
 0x117   :  { %v359_v37 = vpop.eup %358 }
 0x118   :  { %322 = vpush %v359_v37 }
 0x119   :  { %324 = vpush %v240_v38 }
 0x11a   :  { %326 = vpush %v242_v39 }
 0x149   :  { %s323_s11 = spop %322 }
 0x14a   :  { %s496_s12 = smul.f32 %s323_s11, %s319_s2  ;;  %s325_s13 = spop %324 }
 0x14b   :  { %s327_s14 = spop %326 }
 0x14c   :  { %274 = sst [smem:[#allocation2]] %s496_s12  ;;  %s244_s15 = smul.f32 2.0, %s327_s14 }
 0x14e   :  { %v245_v40 = vstv %s244_s15 }
 0x14f   :  { %360 = vrcp.f32 %v245_v40 }
 0x15c   :  { %v361_v41 = vpop.eup %360 }
 0x15d   :  { %328 = vpush %v361_v41 }
 0x15e   :  { %330 = vpush %v249_v42 }
 0x15f   :  { %332 = vpush %v251_v43 }
 0x18e   :  { %s329_s16 = spop %328 }
 0x18f   :  { %s248_s17 = smul.f32 %s329_s16, %s325_s13  ;;  %s331_s18 = spop %330 }
 0x190   :  { %s333_s19 = spop %332 }
 0x191   :  { %276 = sst [smem:[#allocation2 + $0x1]] %s248_s17  ;;  %v253_v44 = vstv %s333_s19 }
 0x192   :  { %362 = vrcp.f32 %v253_v44  ;;  %s283_s23 = sadd.f32 %s248_s17, %s496_s12 }
 0x19f   :  { %v363_v47 = vpop.eup %362 }
 0x1a0   :  { %334 = vpush %v363_v47 }
 0x1a1   :  { %336 = vpush %v232_v45 }
 0x1a2   :  { %338 = vpush %v258_v46 }
 0x1d1   :  { %s335_s20 = spop %334 }
 0x1d2   :  { %s256_s21 = smul.f32 %s335_s20, %s331_s18  ;;  %s337_s22 = spop %336 }
 0x1d3   :  { %s339_s24 = spop %338 }
 0x1d4   :  { %278 = sst [smem:[#allocation2 + $0x2]] %s256_s21  ;;  %v260_v48 = vstv %s339_s24 }
 0x1d5   :  { %s284_s25 = sadd.f32 %s283_s23, %s256_s21  ;;  %364 = vrcp.f32 %v260_v48 }
 0x1e2   :  { %v365_v49 = vpop.eup %364 }
 0x1e3   :  { %340 = vpush %v365_v49 }
 0x1e4   :  { %342 = vpush %v264_v50 }
 0x1e5   :  { %344 = vpush %v267_v51 }
 0x214   :  { %s341_s26 = spop %340 }
 0x215   :  { %s263_s0 = smul.f32 %s341_s26, %s337_s22  ;;  %s343_s27 = spop %342 }
 0x216   :  { %s345_s1 = spop %344  ;;  %s266_s29 = smul.f32 10.0, %s343_s27 }
 0x217   :  { %280 = sst [smem:[#allocation2 + $0x3]] %s263_s0  ;;  %v269_v52 = vstv %s345_s1 }
 0x218   :  { %s285_s28 = sadd.f32 %s284_s25, %s263_s0  ;;  %366 = vrcp.f32 %v269_v52 }
 0x225   :  { %v367_v53 = vpop.eup %366 }
 0x226   :  { %346 = vpush %v367_v53 }
 0x257   :  { %s347_s30 = spop %346 }
 0x258   :  { %s272_s8 = smul.f32 %s347_s30, %s266_s29 }
 0x25a   :  { %282 = sst [smem:[#allocation2 + $0x4]] %s272_s8 }
 0x25b   :  { %s286_s9 = sadd.f32 %s285_s28, %s272_s8 }
 0x25d   :  { %288 = sst [smem:[#allocation2 + $0x5]] %s286_s9 }
 0x25e   :  { %379 = shalt.err (!%p376_p4)
}
 0x25f   :  { %s383_s2 = smov [#allocation2]  }
 0x260   :  { %298 = dma.smem_to_vmem %s383_s2, 16, %s296_s7, [#allocation3]  }
 0x261   :  { %380 = dma.done.wait [#allocation3], 16  }
 0x262   :  { %381 = vsyncadd [#allocation3], 4294967280 }
 0x263   :  { %302 = sfence }
 0x264   :  { %303 = vsyncpa [#allocation3], 1 }

</bundles_post_ra>
